<compile_context>
chip_gen: v6e
topology: v6e:2x2x1
jax: 0.10.0
libtpu: 0.0.40
codegen_flags: <defaults>
</compile_context>

<pallas_src>
import jax
import jax.numpy as jnp
from jax.experimental import pallas as pl
from jax.experimental.pallas import tpu as pltpu


def _cdiv(a, b):
    return -(-a // b)


def _round_up(x, m):
    return _cdiv(x, m) * m


def _mlp_kernel(x_ref, w1_ref, b1_ref, w2_ref, b2_ref, w3_ref, b3_ref, o_ref):
    # x arrives as f32 from HBM; cast to the MXU compute dtype on the VPU
    # (hidden under the tile DMA). No-op when compute dtype is f32.
    x = x_ref[...].astype(w1_ref.dtype)

    # Layer 1: Linear (f32 accumulate on MXU) + bias + ReLU (f32 VPU)
    h1 = jnp.dot(x, w1_ref[...], preferred_element_type=jnp.float32)
    h1 = jnp.maximum(h1 + b1_ref[...], 0.0)

    # Layer 2: Linear + Sigmoid (sigmoid in f32 on the EUP)
    h2 = jnp.dot(h1.astype(w2_ref.dtype), w2_ref[...],
                 preferred_element_type=jnp.float32)
    h2 = jax.nn.sigmoid(h2 + b2_ref[...])

    # Output layer: Linear. Output stays narrow (n_out lanes, masked store) —
    # far cheaper than writing a 128-lane zero-padded slab to HBM.
    out = jnp.dot(h2.astype(w3_ref.dtype), w3_ref[...],
                  preferred_element_type=jnp.float32)
    o_ref[...] = (out + b3_ref[...]).astype(o_ref.dtype)


def _choose_batch_tiling(B, tb_target, sub):
    """Pick (tb, B_pad, n_steps) minimizing padding; >=2 steps for big batches."""
    n_steps = max(1, _cdiv(B, tb_target))
    # Guarantee >=2 grid steps for non-tiny batches so ("parallel",) semantics
    # can shard the grid over v7x's two TensorCores (free ~2x there, one extra
    # ~0.35us step on v5e/v6e). Tiny batches keep a single step.
    if n_steps == 1 and B >= 256:
        n_steps = 2
    tb = max(sub, _round_up(_cdiv(B, n_steps), sub))
    B_pad = n_steps * tb
    return tb, B_pad, n_steps


def mlp_forward(x, params, *, batch_tile=2048, compute_dtype=jnp.bfloat16,
                out_dtype=None):
    """Run the 3-layer MLP forward pass inside a single fused Pallas kernel.

    x:      (B, n_input) float32
    params: dict with w1 (n_in, n_hid), b1 (1, n_hid),
                      w2 (n_hid, n_hid), b2 (1, n_hid),
                      w3 (n_hid, n_out), b3 (1, n_out)
    compute_dtype: MXU operand dtype (bf16 default; pass f32 for exactness).
    out_dtype: HBM output dtype (defaults to x.dtype; bf16 halves the write
               stream if downstream tolerates it).
    """
    w1, b1 = params["w1"], params["b1"]
    w2, b2 = params["w2"], params["b2"]
    w3, b3 = params["w3"], params["b3"]

    B, n_in = x.shape
    n_hid = w1.shape[1]
    n_out = w3.shape[1]
    out_dtype = x.dtype if out_dtype is None else out_dtype

    # ---- batch tiling: minimal padding, sublane-aligned tiles -----------------
    # x streams as f32 (sublane=8); a bf16 output block needs a 16-row multiple.
    sub = 16 if jnp.dtype(out_dtype) == jnp.dtype(jnp.bfloat16) else 8
    tb, B_pad, _ = _choose_batch_tiling(B, int(batch_tile), sub)
    grid = (B_pad // tb,)

    # ---- operands --------------------------------------------------------------
    # x stays f32 in HBM (cast happens in-kernel); only pad the (few) extra rows
    # required to make the grid exact.
    xk = x if B_pad == B else jnp.pad(x, ((0, B_pad - B), (0, 0)))
    w1c = w1.astype(compute_dtype)
    w2c = w2.astype(compute_dtype)
    w3c = w3.astype(compute_dtype)
    b1c = b1.astype(jnp.float32)
    b2c = b2.astype(jnp.float32)
    b3c = b3.astype(jnp.float32)

    # Weights/biases are small: replicate the full tensors to every grid step
    # (constant index_map -> resident in VMEM across the pipeline).
    def full(a):
        return pl.BlockSpec(a.shape, lambda i: (0,) * a.ndim)

    # ---- cost estimate so XLA can schedule around the custom call -------------
    flops = 2 * B_pad * (n_in * n_hid + n_hid * n_hid + n_hid * n_out)
    param_bytes = sum(int(a.size) * a.dtype.itemsize
                      for a in (w1c, b1c, w2c, b2c, w3c, b3c))
    bytes_accessed = (int(xk.size) * xk.dtype.itemsize
                      + B_pad * n_out * jnp.dtype(out_dtype).itemsize
                      + param_bytes)
    cost = pl.CostEstimate(flops=flops,
                           transcendentals=B_pad * n_hid,   # sigmoid exp
                           bytes_accessed=bytes_accessed)

    out = pl.pallas_call(
        _mlp_kernel,
        out_shape=jax.ShapeDtypeStruct((B_pad, n_out), out_dtype),
        grid_spec=pltpu.PrefetchScalarGridSpec(
            num_scalar_prefetch=0,
            grid=grid,
            in_specs=[
                pl.BlockSpec((tb, n_in), lambda i: (i, 0)),   # x tile over batch
                full(w1c), full(b1c),
                full(w2c), full(b2c),
                full(w3c), full(b3c),
            ],
            # Narrow (tb, n_out) block: last dim equals the full array dim, so
            # it is legal; the masked store beats a 128-lane padded HBM slab.
            out_specs=pl.BlockSpec((tb, n_out), lambda i: (i, 0)),
        ),
        compiler_params=pltpu.CompilerParams(
            # Megacore / dual-TC sharding on the batch axis.
            dimension_semantics=("parallel",),
            # 32 MiB is ample at these feature sizes and safe on v7x (64 MiB
            # physical); v5e/v6e could go higher if n_hidden grows.
            vmem_limit_bytes=32 * 1024 * 1024,
        ),
        cost_estimate=cost,
    )(xk, w1c, b1c, w2c, b2c, w3c, b3c)

    # Only strip batch padding when we actually added it (usually 0 rows now).
    return out if B_pad == B else out[:B]


def init_params(key, n_input, n_hidden, n_output, dtype=jnp.float32):
    """Deterministic PyTorch-style (uniform +/- 1/sqrt(fan_in)) init."""
    ks = jax.random.split(key, 6)

    def linear(kw, kb, fan_in, fan_out):
        bound = 1.0 / jnp.sqrt(fan_in)
        w = jax.random.uniform(kw, (fan_in, fan_out), dtype, -bound, bound)
        b = jax.random.uniform(kb, (1, fan_out), dtype, -bound, bound)
        return w, b

    w1, b1 = linear(ks[0], ks[1], n_input, n_hidden)
    w2, b2 = linear(ks[2], ks[3], n_hidden, n_hidden)
    w3, b3 = linear(ks[4], ks[5], n_hidden, n_output)
    return {"w1": w1, "b1": b1, "w2": w2, "b2": b2, "w3": w3, "b3": b3}


def mlp_reference(x, p):
    h1 = jnp.maximum(x @ p["w1"] + p["b1"], 0.0)
    h2 = jax.nn.sigmoid(h1 @ p["w2"] + p["b2"])
    return h2 @ p["w3"] + p["b3"]


if __name__ == "__main__":
    # Small shapes consistent with Net(n_input, n_hidden, n_output)
    batch, n_input, n_hidden, n_output = 8, 16, 32, 4

    key = jax.random.PRNGKey(0)
    k_x, k_p, k_x2, k_x3 = jax.random.split(key, 4)

    x = jax.random.normal(k_x, (batch, n_input), dtype=jnp.float32)
    params = init_params(k_p, n_input, n_hidden, n_output)
    ref = mlp_reference(x, params)

    # 1) f32 compute path: tight check against the JAX reference.
    out_f32 = jax.block_until_ready(
        mlp_forward(x, params, compute_dtype=jnp.float32))
    assert out_f32.shape == (batch, n_output)
    assert jnp.allclose(out_f32, ref, atol=1e-5, rtol=1e-5)

    # 2) Default bf16-MXU path (f32 accumulation): loose-tolerance check.
    #    NOTE: bf16 operand casts trade a little precision for HBM/MXU speed;
    #    pass compute_dtype=jnp.float32 for exactness.
    out_bf16 = jax.block_until_ready(mlp_forward(x, params))
    assert out_bf16.shape == (batch, n_output)
    assert jnp.allclose(out_bf16, ref, atol=5e-2, rtol=5e-2)

    # 3) Larger batch that divides evenly under the new tiling:
    #    B=1040 -> 2 steps of 520 rows, zero padding, 2-way core parallelism.
    x_big = jax.random.normal(k_x2, (1040, n_input), dtype=jnp.float32)
    out_big = jax.block_until_ready(mlp_forward(x_big, params))
    ref_big = mlp_reference(x_big, params)
    assert out_big.shape == (1040, n_output)
    assert jnp.allclose(out_big, ref_big, atol=5e-2, rtol=5e-2)

    # 4) Odd batch exercising the (tiny) residual padding path: B=1037 ->
    #    2 steps of 520 rows, 3 padded rows, sliced off on return.
    x_odd = jax.random.normal(k_x3, (1037, n_input), dtype=jnp.float32)
    out_odd = jax.block_until_ready(mlp_forward(x_odd, params))
    ref_odd = mlp_reference(x_odd, params)
    assert out_odd.shape == (1037, n_output)
    assert jnp.allclose(out_odd, ref_odd, atol=5e-2, rtol=5e-2)

    print("KERNEL_OK")
</pallas_src>

<mosaic_0001>
module attributes {stable_mosaic.version = 11 : i64} {
  func.func @_mlp_kernel(%arg0: i32, %arg1: memref<8x16xf32, #tpu.memory_space<vmem>>, %arg2: memref<16x32xf32, #tpu.memory_space<vmem>>, %arg3: memref<1x32xf32, #tpu.memory_space<vmem>>, %arg4: memref<32x32xf32, #tpu.memory_space<vmem>>, %arg5: memref<1x32xf32, #tpu.memory_space<vmem>>, %arg6: memref<32x4xf32, #tpu.memory_space<vmem>>, %arg7: memref<1x4xf32, #tpu.memory_space<vmem>>, %arg8: memref<8x4xf32, #tpu.memory_space<vmem>>) attributes {dimension_semantics = [#tpu.dimension_semantics<parallel>], iteration_bounds = array<i64: 1>, scalar_prefetch = 0 : i64, scratch_operands = 0 : i64, tpu.core_type = #tpu.core_type<tc>, window_params = [{transform_indices = @transform_0, window_bounds = array<i64: 8, 16>}, {pipeline_mode = #tpu.pipeline_mode<synchronous>, transform_indices = @transform_1, window_bounds = array<i64: 16, 32>}, {pipeline_mode = #tpu.pipeline_mode<synchronous>, transform_indices = @transform_2, window_bounds = array<i64: 1, 32>}, {pipeline_mode = #tpu.pipeline_mode<synchronous>, transform_indices = @transform_3, window_bounds = array<i64: 32, 32>}, {pipeline_mode = #tpu.pipeline_mode<synchronous>, transform_indices = @transform_4, window_bounds = array<i64: 1, 32>}, {pipeline_mode = #tpu.pipeline_mode<synchronous>, transform_indices = @transform_5, window_bounds = array<i64: 32, 4>}, {pipeline_mode = #tpu.pipeline_mode<synchronous>, transform_indices = @transform_6, window_bounds = array<i64: 1, 4>}, {transform_indices = @transform_7, window_bounds = array<i64: 8, 4>}]} {
    %c0 = arith.constant 0 : index
    %c0_0 = arith.constant 0 : index
    %0 = vector.load %arg1[%c0, %c0_0] : memref<8x16xf32, #tpu.memory_space<vmem>>, vector<8x16xf32>
    %c0_1 = arith.constant 0 : index
    %c0_2 = arith.constant 0 : index
    %1 = vector.load %arg2[%c0_1, %c0_2] : memref<16x32xf32, #tpu.memory_space<vmem>>, vector<16x32xf32>
    %cst = arith.constant dense<0.000000e+00> : vector<8x32xf32>
    %2 = tpu.matmul %0, %1, %cst {dimension_numbers = #tpu.dot_dimension_numbers<[1], [0], [0], [1], [0, 0, 1, 1], [], []>} : vector<8x16xf32>, vector<16x32xf32>, vector<8x32xf32> -> vector<8x32xf32>
    %c0_3 = arith.constant 0 : index
    %c0_4 = arith.constant 0 : index
    %3 = vector.load %arg3[%c0_3, %c0_4] : memref<1x32xf32, #tpu.memory_space<vmem>>, vector<1x32xf32>
    %4 = vector.broadcast %3 : vector<1x32xf32> to vector<8x32xf32>
    %5 = arith.addf %2, %4 : vector<8x32xf32>
    %cst_5 = arith.constant 0.000000e+00 : f32
    %6 = vector.broadcast %cst_5 : f32 to vector<8x32xf32>
    %7 = arith.maximumf %5, %6 : vector<8x32xf32>
    %c0_6 = arith.constant 0 : index
    %c0_7 = arith.constant 0 : index
    %8 = vector.load %arg4[%c0_6, %c0_7] : memref<32x32xf32, #tpu.memory_space<vmem>>, vector<32x32xf32>
    %cst_8 = arith.constant dense<0.000000e+00> : vector<8x32xf32>
    %9 = tpu.matmul %7, %8, %cst_8 {dimension_numbers = #tpu.dot_dimension_numbers<[1], [0], [0], [1], [0, 0, 1, 1], [], []>} : vector<8x32xf32>, vector<32x32xf32>, vector<8x32xf32> -> vector<8x32xf32>
    %c0_9 = arith.constant 0 : index
    %c0_10 = arith.constant 0 : index
    %10 = vector.load %arg5[%c0_9, %c0_10] : memref<1x32xf32, #tpu.memory_space<vmem>>, vector<1x32xf32>
    %11 = vector.broadcast %10 : vector<1x32xf32> to vector<8x32xf32>
    %12 = arith.addf %9, %11 : vector<8x32xf32>
    %13 = arith.negf %12 : vector<8x32xf32>
    %14 = math.exp %13 : vector<8x32xf32>
    %cst_11 = arith.constant 1.000000e+00 : f32
    %15 = vector.broadcast %cst_11 : f32 to vector<8x32xf32>
    %16 = arith.addf %15, %14 : vector<8x32xf32>
    %17 = arith.divf %15, %16 : vector<8x32xf32>
    %c0_12 = arith.constant 0 : index
    %c0_13 = arith.constant 0 : index
    %18 = vector.load %arg6[%c0_12, %c0_13] : memref<32x4xf32, #tpu.memory_space<vmem>>, vector<32x4xf32>
    %cst_14 = arith.constant dense<0.000000e+00> : vector<8x4xf32>
    %19 = tpu.matmul %17, %18, %cst_14 {dimension_numbers = #tpu.dot_dimension_numbers<[1], [0], [0], [1], [0, 0, 1, 1], [], []>} : vector<8x32xf32>, vector<32x4xf32>, vector<8x4xf32> -> vector<8x4xf32>
    %c0_15 = arith.constant 0 : index
    %c0_16 = arith.constant 0 : index
    %20 = vector.load %arg7[%c0_15, %c0_16] : memref<1x4xf32, #tpu.memory_space<vmem>>, vector<1x4xf32>
    %21 = vector.broadcast %20 : vector<1x4xf32> to vector<8x4xf32>
    %22 = arith.addf %19, %21 : vector<8x4xf32>
    %c0_17 = arith.constant 0 : index
    %c0_18 = arith.constant 0 : index
    %23 = vector.load %arg8[%c0_17, %c0_18] : memref<8x4xf32, #tpu.memory_space<vmem>>, vector<8x4xf32>
    tpu.vector_store %arg8[%c0_17, %c0_18], %22 {strides = array<i32>} : memref<8x4xf32, #tpu.memory_space<vmem>>, vector<8x4xf32>,
    return
  }
  func.func @transform_0(%arg0: i32) -> (i32, i32) {
    %c0_i32 = arith.constant 0 : i32
    %c0_i32_0 = arith.constant 0 : i32
    return %arg0, %c0_i32 : i32, i32
  }
  func.func @transform_1(%arg0: i32) -> (i32, i32) {
    %c0_i32 = arith.constant 0 : i32
    %c0_i32_0 = arith.constant 0 : i32
    %c0_i32_1 = arith.constant 0 : i32
    return %c0_i32, %c0_i32_0 : i32, i32
  }
  func.func @transform_2(%arg0: i32) -> (i32, i32) {
    %c0_i32 = arith.constant 0 : i32
    %c0_i32_0 = arith.constant 0 : i32
    %c0_i32_1 = arith.constant 0 : i32
    return %c0_i32, %c0_i32_0 : i32, i32
  }
  func.func @transform_3(%arg0: i32) -> (i32, i32) {
    %c0_i32 = arith.constant 0 : i32
    %c0_i32_0 = arith.constant 0 : i32
    %c0_i32_1 = arith.constant 0 : i32
    return %c0_i32, %c0_i32_0 : i32, i32
  }
  func.func @transform_4(%arg0: i32) -> (i32, i32) {
    %c0_i32 = arith.constant 0 : i32
    %c0_i32_0 = arith.constant 0 : i32
    %c0_i32_1 = arith.constant 0 : i32
    return %c0_i32, %c0_i32_0 : i32, i32
  }
  func.func @transform_5(%arg0: i32) -> (i32, i32) {
    %c0_i32 = arith.constant 0 : i32
    %c0_i32_0 = arith.constant 0 : i32
    %c0_i32_1 = arith.constant 0 : i32
    return %c0_i32, %c0_i32_0 : i32, i32
  }
  func.func @transform_6(%arg0: i32) -> (i32, i32) {
    %c0_i32 = arith.constant 0 : i32
    %c0_i32_0 = arith.constant 0 : i32
    %c0_i32_1 = arith.constant 0 : i32
    return %c0_i32, %c0_i32_0 : i32, i32
  }
  func.func @transform_7(%arg0: i32) -> (i32, i32) {
    %c0_i32 = arith.constant 0 : i32
    %c0_i32_0 = arith.constant 0 : i32
    return %arg0, %c0_i32 : i32, i32
  }
}

</mosaic_0001>

<bundles_post_ra>
// kernel: tpu_custom_call.1
= control target key start
LH: loop header
LB: loop body
LE: loop exit
PB: predicated region body
PF: predicated region fallthrough
CT: control target
= control target key end

     0   :  { %12 = vsyncpa [#allocation3], 0  ;;  %s516_s0 = inlined_call_operand.vmem [shape: f32[8,16], index: 0, kind: input, shape index: {}]   ;;  %s517_s1 = inlined_call_operand.hbm [shape: f32[16,32], index: 1, kind: input, shape index: {}]   ;;  %s518_s2 = inlined_call_operand.vmem [shape: f32[1,32], index: 2, kind: input, shape index: {}]   ;;  %s519_s3 = inlined_call_operand.vmem [shape: f32[32,32], index: 3, kind: input, shape index: {}]   ;;  %s520_s4 = inlined_call_operand.hbm [shape: f32[1,32], index: 4, kind: input, shape index: {}]   ;;  %s521_s5 = inlined_call_operand.vmem [shape: f32[32,4], index: 5, kind: input, shape index: {}]   ;;  %s522_s6 = inlined_call_operand.vmem [shape: f32[1,4], index: 6, kind: input, shape index: {}]   ;;  %s523_s7 = inlined_call_operand.vmem [shape: f32[8,4], index: 7, kind: output, shape index: {}]  }
   0x1   :  { %13 = vsyncpa [#allocation5], 0  ;;  %s423_s24 = smov [#allocation2]  }
   0x2   :  { %s21_s25 = sshll.u32 %s423_s24, 4  ;;  %s22_s25 = int_to_ptr.vmem [resolvable:$true] %s21_s25 }
   0x3   :  { %s387_s26 = scalar_lea.vmem %s22_s25, 256  ;;  %p392_p1 = scmp.lt.s32.totalorder %s22_s25, %s22_s25 }
   0x4   :  { %p388_p0 = scmp.ne.s32.totalorder %s22_s25, %s387_s26  ;;  %p393_p2 = scmp.lt.s32.totalorder %s387_s26, %s387_s26 }
   0x6   :  { %p394_p3 = por %p393_p2, %p392_p1 }
   0x8   :  { %p395_p4 = pnand %p394_p3, %p388_p0 }
   0xa   :  { %398 = shalt.err (!%p395_p4)
}
   0xb   :  { %s424_s27 = smov 128   ;;  %s425_s28 = smov 8  }
   0xc   :  { %27 = dma.hbm_to_vmem [thread:$0]  %s517_s1, 256, %s22_s25, [#allocation3], %s424_s27, %s424_s27, %s425_s28  }
   0xd   :  { %s426_s8 = smov [#allocation4]  }
   0xe   :  { %s38_s9 = sshll.u32 %s426_s8, 4  ;;  %s39_s9 = int_to_ptr.vmem [resolvable:$true] %s38_s9 }
   0xf   :  { %s407_s10 = scalar_lea.vmem %s39_s9, 16  ;;  %s411_s11 = scalar_lea.vmem %s39_s9, 32 }
  0x10   :  { %p408_p5 = scmp.ne.s32.totalorder %s39_s9, %s407_s10  ;;  %p412_p6 = scmp.lt.s32.totalorder %s39_s9, %s39_s9 }
  0x11   :  { %p413_p7 = scmp.lt.s32.totalorder %s411_s11, %s407_s10 }
  0x13   :  { %p414_p8 = por %p413_p7, %p412_p6 }
  0x15   :  { %p415_p9 = pnand %p414_p8, %p408_p5 }
  0x17   :  { %418 = shalt.err (!%p415_p9)
}
  0x18   :  { %41 = dma.hbm_to_vmem [thread:$0]  %s520_s4, 16, %s39_s9, [#allocation5]  }
  0x19   :  { %419 = dma.done.wait [#allocation3], 256  }
  0x1a   :  { %420 = vsyncadd [#allocation3], 4294967040 }
  0x1b   :  { %421 = dma.done.wait [#allocation5], 16  }
  0x1c   :  { %422 = vsyncadd [#allocation5], 4294967280  ;;  %v427_v0 = vmov 0.0   ;;  %vm428_vm0 = vmmov 0   ;;  %v54_v1 = vld [vmem:[#allocation2 + $0x8] sm:$0xff]  ;;  %v53_v2 = vld [vmem:[#allocation2] sm:$0xff] }
  0x1d   :  { %340 = vmatprep.subr.mxu0 %v427_v0  ;;  %344 = vmatprep.mubr.msk.f32.mxu0 %vm428_vm0, %v427_v0  ;;  %v52_v3 = vld [vmem:[%s516_s0] sm:$0xff]  ;;  %vm62_vm1 = vcmask 130048   ;;  %v140_v4 = vld [vmem:[%s519_s3 + $0x18] sm:$0xff]  ;;  %v139_v5 = vld [vmem:[%s519_s3 + $0x10] sm:$0xff]  ;;  %vm148_vm2 = vcmask 261120   ;;  %vm312_vm3 = vcmask 31744  }
  0x1e   :  { %347 = vmatprep.subr.mxu1 %v427_v0  ;;  %355 = vmatprep.mubr.msk.f32.mxu1 %vm428_vm0, %v427_v0  ;;  %v138_v6 = vld [vmem:[%s519_s3 + $0x8] sm:$0xff]  ;;  %v137_v7 = vld [vmem:[%s519_s3] sm:$0xff]  ;;  %v231_v13 = vld [vmem:[%s521_s5 + $0x18] sm:$0xff] }
  0x1f   :  { %341 = vmatpush3.msra.mxu0 %v54_v1  ;;  %348 = vmatpush3.msra.mxu1 %v140_v4  ;;  %v320_v8 = vld [vmem:[%s518_s2] ss:$0 sm:$0xff]  ;;  %v230_v14 = vld [vmem:[%s521_s5 + $0x10] sm:$0xff]  ;;  %v229_v15 = vld [vmem:[%s521_s5 + $0x8] sm:$0xff] }
  0x20   :  { %342 = vmatprep.subr.mxu0 %v427_v0  ;;  %349 = vmatprep.subr.mxu1 %v427_v0  ;;  %v228_v16 = vld [vmem:[%s521_s5] sm:$0xff]  ;;  %v322_v17 = vld [vmem:[#allocation4] ss:$0 sm:$0xff] }
  0x21   :  { %343 = vmatpush3.msra.mxu0 %v53_v2  ;;  %350 = vmatpush3.msra.mxu1 %v139_v5  ;;  %v325_v25 = vld [vmem:[%s522_s6] ss:$0 sm:$0xff] }
  0x22   :  { %345 = vmatmul.mubr.msk.f32.vlgmr.msra.gmra.mxu0 %vm62_vm1, %v52_v3  ;;  %358 = vmatprep.subr.mxu0 %v427_v0 }
  0x23   :  { %366 = vmatprep.mubr.msk.f32.mxu0 %vm428_vm0, %v427_v0  ;;  %351 = vmatprep.subr.mxu1 %v427_v0 }
  0x24   :  { %352 = vmatpush3.msra.mxu1 %v138_v6  ;;  %359 = vmatpush3.msra.mxu0 %v231_v13 }
  0x25   :  { %353 = vmatprep.subr.mxu1 %v427_v0  ;;  %360 = vmatprep.subr.mxu0 %v427_v0 }
  0x26   :  { %354 = vmatpush3.msra.mxu1 %v137_v7  ;;  %361 = vmatpush3.msra.mxu0 %v230_v14 }
  0x27   :  { %362 = vmatprep.subr.mxu0 %v427_v0 }
  0x28   :  { %363 = vmatpush3.msra.mxu0 %v229_v15 }
  0x29   :  { %364 = vmatprep.subr.mxu0 %v427_v0 }
  0x2a   :  { %365 = vmatpush3.msra.mxu0 %v228_v16 }
  0xe2   :  { %v132_v9 = vpop.f32.mrf.mxu0 }
  0xe3   :  { %v133_v10 = vadd.f32 %v320_v8, %v132_v9 }
  0xe4   :  { %v346_v11 = vpop.f32.mrf.mxu0 }
  0xe5   :  { %v136_v12 = vmax.f32 %v133_v10, 0.0 }
  0xe7   :  { %356 = vmatmul.mubr.msk.f32.vlgmr.msra.gmra.mxu1 %vm148_vm2, %v136_v12 }
 0x1a7   :  { %v218_v18 = vpop.f32.mrf.mxu1 }
 0x1a8   :  { %v219_v19 = vadd.f32 %v322_v17, %v218_v18 }
 0x1a9   :  { %v357_v20 = vpop.f32.mrf.mxu1 }
 0x1aa   :  { %v324_v21 = vmul.f32 -1.442695, %v219_v19 }
 0x1ac   :  { %375 = vpow2.f32 %v324_v21 }
 0x1b9   :  { %v376_v22 = vpop.eup %375 }
 0x1ba   :  { %v225_v23 = vadd.f32 1.0, %v376_v22 }
 0x1bc   :  { %377 = vrcp.f32 %v225_v23 }
 0x1c9   :  { %v378_v24 = vpop.eup %377 }
 0x1ca   :  { %367 = vmatmul.mubr.msk.f32.vlgmr.msra.gmra.mxu0 %vm148_vm2, %v378_v24 }
 0x28a   :  { %v308_v26 = vpop.f32.mrf.mxu0 }
 0x28b   :  { %v309_v27 = vadd.f32 %v325_v25, %v308_v26 }
 0x28c   :  { %v368_v28 = vpop.f32.mrf.mxu0 }
 0x28d   :  { %313 = vst.msk [vmem:[%s523_s7] sm:$0xff] %vm312_vm3, %v309_v27 }
 0x28e   :  { %318 = vsyncpa [#allocation3], 1 }
 0x28f   :  { %319 = vsyncpa [#allocation5], 1 }

</bundles_post_ra>
